<compile_context>
chip_gen: v7x
topology: tpu7x:2x2x1
jax: 0.10.0
libtpu: 0.0.40
codegen_flags: <defaults>
</compile_context>

<pallas_src>
import functools

import jax
import jax.numpy as jnp
from jax.experimental import pallas as pl
from jax.experimental.pallas import tpu as pltpu

LANE = 128
SUBLANE_BF16 = 16            # bf16 packs 16 rows per sublane group
MAX_X_TILE_BYTES = 4 << 20   # per-buffer cap on the x tile (double-buffered by Pallas)


def _round_up(n, m):
    return ((n + m - 1) // m) * m


def _cdiv(a, b):
    return (a + b - 1) // b


def mlp_kernel(x_ref, w1_ref, b1_ref, w2_ref, b2_ref, w3_ref, b3_ref, o_ref):
    # Fused Linear->ReLU->(Dropout eval no-op)->Linear->ReLU->Linear on one batch
    # tile. x arrives f32 and is cast to bf16 on the VPU (hidden under the DMA
    # pipeline); matmuls use bf16 operands on the MXU with f32 accumulation;
    # bias-add / ReLU stay f32.
    x = x_ref[...].astype(jnp.bfloat16)                                 # (tile, D)

    h1 = jnp.dot(x, w1_ref[...], preferred_element_type=jnp.float32) + b1_ref[...]
    h1 = jnp.maximum(h1, 0.0).astype(jnp.bfloat16)

    # TODO(synk): Dropout(0.3) is identity in eval mode; training-mode dropout would
    # use pltpu.prng_seed + pltpu.stateful_bernoulli here.

    h2 = jnp.dot(h1, w2_ref[...], preferred_element_type=jnp.float32) + b2_ref[...]
    h2 = jnp.maximum(h2, 0.0).astype(jnp.bfloat16)

    out = jnp.dot(h2, w3_ref[...], preferred_element_type=jnp.float32) + b3_ref[...]
    o_ref[...] = out.astype(o_ref.dtype)                                # (tile, C)


@functools.partial(jax.jit, static_argnames=("batch_tile",))
def _mlp_forward(x, w1, b1, w2, b2, w3, b3, batch_tile):
    B, D = x.shape
    H1 = w1.shape[1]          # 128
    H2 = w2.shape[1]          # 64
    C = w3.shape[1]           # num_classes

    # Batch tile: multiple of 16 (bf16 sublane packing), no larger than needed to
    # cover B, capped so the double-buffered x tile stays within a few MiB of VMEM.
    tile = min(batch_tile, _round_up(B, SUBLANE_BF16))
    rows_cap = max(SUBLANE_BF16,
                   (MAX_X_TILE_BYTES // max(D * 2, 1)) // SUBLANE_BF16 * SUBLANE_BF16)
    tile = max(SUBLANE_BF16, min(tile, rows_cap))
    grid = (_cdiv(B, tile),)  # ragged last block is masked by Pallas (no jnp.pad of x)

    # Weights / biases are small and have constant index_maps -> DMA'd once.
    full = lambda shape: pl.BlockSpec(shape, lambda i: tuple(0 for _ in shape))

    cost = pl.CostEstimate(
        flops=2 * B * (D * H1 + H1 * H2 + H2 * C),
        transcendentals=0,
        bytes_accessed=(x.size * 4
                        + (w1.size + w2.size + w3.size) * 2
                        + (b1.size + b2.size + b3.size) * 4
                        + B * C * 4),
    )

    return pl.pallas_call(
        mlp_kernel,
        out_shape=jax.ShapeDtypeStruct((B, C), x.dtype),
        grid_spec=pltpu.PrefetchScalarGridSpec(
            num_scalar_prefetch=0,
            grid=grid,
            in_specs=[
                pl.BlockSpec((tile, D), lambda i: (i, 0)),  # x tile (f32; cast in-kernel)
                full((D, H1)),   # W1 (bf16)
                full((1, H1)),   # b1 (f32)
                full((H1, H2)),  # W2 (bf16)
                full((1, H2)),   # b2 (f32)
                full((H2, C)),   # W3 (bf16, unpadded: tiny masked store beats 16x writeback)
                full((1, C)),    # b3 (f32)
            ],
            out_specs=pl.BlockSpec((tile, C), lambda i: (i, 0)),
        ),
        compiler_params=pltpu.CompilerParams(
            dimension_semantics=("parallel",),
            vmem_limit_bytes=32 * 1024 * 1024,   # v5e default scoped limit is only 16 MiB
        ),
        cost_estimate=cost,
    )(x, w1, b1, w2, b2, w3, b3)


def _default_batch_tile(batch):
    # Big tiles amortize the ~0.35 us per-grid-step overhead (single-TC v5e/v6e want
    # the fewest steps). On v7x (2 TensorCores) keep >=2 "parallel" grid steps when
    # the batch is big enough to split, so both TCs engage.
    tile = 4096
    try:
        multi_tc = "v7" in jax.devices()[0].device_kind.lower()
    except Exception:  # pragma: no cover - defensive; default to single-TC behavior
        multi_tc = False
    if multi_tc and batch >= 2 * SUBLANE_BF16:
        tile = min(tile, _round_up(_cdiv(batch, 2), SUBLANE_BF16))
    return tile


def audio_feature_mlp(x, prepared_params, batch_tile=None):
    """Fused MLP forward as one Pallas kernel, tiled over the batch axis.

    `prepared_params` comes from prepare_params() (bf16 weights, f32 biases),
    done once outside the per-call path.
    """
    if batch_tile is None:
        batch_tile = _default_batch_tile(x.shape[0])
    w1, b1, w2, b2, w3, b3 = prepared_params
    return _mlp_forward(x, w1, b1, w2, b2, w3, b3, batch_tile=batch_tile)


def init_params(key, input_dim, num_classes):
    """Deterministic init mimicking PyTorch nn.Linear default (uniform +/- 1/sqrt(fan_in)).

    Returned weights are already transposed to (in, out) layout, kept in f32.
    """
    dims = [(input_dim, 128), (128, 64), (64, num_classes)]
    params = []
    for fan_in, fan_out in dims:
        key, kw, kb = jax.random.split(key, 3)
        bound = 1.0 / jnp.sqrt(jnp.float32(fan_in))
        w = jax.random.uniform(kw, (fan_in, fan_out), jnp.float32, -bound, bound)
        b = jax.random.uniform(kb, (1, fan_out), jnp.float32, -bound, bound)
        params += [w, b]
    return tuple(params)


def prepare_params(params):
    """One-time weight prep (outside the jitted forward): bf16 MXU operands, f32 biases."""
    w1, b1, w2, b2, w3, b3 = params
    return (w1.astype(jnp.bfloat16), b1.astype(jnp.float32),
            w2.astype(jnp.bfloat16), b2.astype(jnp.float32),
            w3.astype(jnp.bfloat16), b3.astype(jnp.float32))


def reference_forward(x, params):
    """Plain-JAX reference mirroring the kernel's numerics (bf16 operands, f32 accum)."""
    w1, b1, w2, b2, w3, b3 = params
    xb = x.astype(jnp.bfloat16)
    h1 = jnp.dot(xb, w1.astype(jnp.bfloat16), preferred_element_type=jnp.float32) + b1
    h1 = jnp.maximum(h1, 0.0).astype(jnp.bfloat16)
    h2 = jnp.dot(h1, w2.astype(jnp.bfloat16), preferred_element_type=jnp.float32) + b2
    h2 = jnp.maximum(h2, 0.0).astype(jnp.bfloat16)
    return jnp.dot(h2, w3.astype(jnp.bfloat16), preferred_element_type=jnp.float32) + b3


if __name__ == "__main__":
    key = jax.random.PRNGKey(0)
    batch, input_dim, num_classes = 16, 32, 8

    kx, kp = jax.random.split(key)
    x = jax.random.normal(kx, (batch, input_dim), jnp.float32)
    params = init_params(kp, input_dim, num_classes)
    prepared = prepare_params(params)        # one-time: no per-call weight casts/pads

    out = jax.block_until_ready(audio_feature_mlp(x, prepared))

    ref = reference_forward(x, params)
    assert out.shape == (batch, num_classes), out.shape
    assert jnp.allclose(out, ref, atol=2e-3, rtol=2e-3), "mismatch vs reference"

    print("KERNEL_OK")
</pallas_src>

<mosaic_0001>
module attributes {stable_mosaic.version = 11 : i64} {
  func.func @mlp_kernel(%arg0: i32, %arg1: memref<16x32xf32, #tpu.memory_space<vmem>>, %arg2: memref<32x128xbf16, #tpu.memory_space<vmem>>, %arg3: memref<1x128xf32, #tpu.memory_space<vmem>>, %arg4: memref<128x64xbf16, #tpu.memory_space<vmem>>, %arg5: memref<1x64xf32, #tpu.memory_space<vmem>>, %arg6: memref<64x8xbf16, #tpu.memory_space<vmem>>, %arg7: memref<1x8xf32, #tpu.memory_space<vmem>>, %arg8: memref<16x8xf32, #tpu.memory_space<vmem>>) attributes {dimension_semantics = [#tpu.dimension_semantics<parallel>], iteration_bounds = array<i64: 1>, scalar_prefetch = 0 : i64, scratch_operands = 0 : i64, tpu.core_type = #tpu.core_type<tc>, window_params = [{transform_indices = @transform_0, window_bounds = array<i64: 16, 32>}, {pipeline_mode = #tpu.pipeline_mode<synchronous>, transform_indices = @transform_1, window_bounds = array<i64: 32, 128>}, {pipeline_mode = #tpu.pipeline_mode<synchronous>, transform_indices = @transform_2, window_bounds = array<i64: 1, 128>}, {pipeline_mode = #tpu.pipeline_mode<synchronous>, transform_indices = @transform_3, window_bounds = array<i64: 128, 64>}, {pipeline_mode = #tpu.pipeline_mode<synchronous>, transform_indices = @transform_4, window_bounds = array<i64: 1, 64>}, {pipeline_mode = #tpu.pipeline_mode<synchronous>, transform_indices = @transform_5, window_bounds = array<i64: 64, 8>}, {pipeline_mode = #tpu.pipeline_mode<synchronous>, transform_indices = @transform_6, window_bounds = array<i64: 1, 8>}, {transform_indices = @transform_7, window_bounds = array<i64: 16, 8>}]} {
    %c0 = arith.constant 0 : index
    %c0_0 = arith.constant 0 : index
    %0 = vector.load %arg1[%c0, %c0_0] : memref<16x32xf32, #tpu.memory_space<vmem>>, vector<16x32xf32>
    %1 = arith.truncf %0 : vector<16x32xf32> to vector<16x32xbf16>
    %c0_1 = arith.constant 0 : index
    %c0_2 = arith.constant 0 : index
    %2 = vector.load %arg2[%c0_1, %c0_2] : memref<32x128xbf16, #tpu.memory_space<vmem>>, vector<32x128xbf16>
    %cst = arith.constant dense<0.000000e+00> : vector<16x128xf32>
    %3 = tpu.matmul %1, %2, %cst {dimension_numbers = #tpu.dot_dimension_numbers<[1], [0], [0], [1], [0, 0, 1, 1], [], []>} : vector<16x32xbf16>, vector<32x128xbf16>, vector<16x128xf32> -> vector<16x128xf32>
    %c0_3 = arith.constant 0 : index
    %c0_4 = arith.constant 0 : index
    %4 = vector.load %arg3[%c0_3, %c0_4] : memref<1x128xf32, #tpu.memory_space<vmem>>, vector<1x128xf32>
    %5 = vector.broadcast %4 : vector<1x128xf32> to vector<16x128xf32>
    %6 = arith.addf %3, %5 : vector<16x128xf32>
    %cst_5 = arith.constant 0.000000e+00 : f32
    %7 = vector.broadcast %cst_5 : f32 to vector<16x128xf32>
    %8 = arith.maximumf %6, %7 : vector<16x128xf32>
    %9 = arith.truncf %8 : vector<16x128xf32> to vector<16x128xbf16>
    %c0_6 = arith.constant 0 : index
    %c0_7 = arith.constant 0 : index
    %10 = vector.load %arg4[%c0_6, %c0_7] : memref<128x64xbf16, #tpu.memory_space<vmem>>, vector<128x64xbf16>
    %cst_8 = arith.constant dense<0.000000e+00> : vector<16x64xf32>
    %11 = tpu.matmul %9, %10, %cst_8 {dimension_numbers = #tpu.dot_dimension_numbers<[1], [0], [0], [1], [0, 0, 1, 1], [], []>} : vector<16x128xbf16>, vector<128x64xbf16>, vector<16x64xf32> -> vector<16x64xf32>
    %c0_9 = arith.constant 0 : index
    %c0_10 = arith.constant 0 : index
    %12 = vector.load %arg5[%c0_9, %c0_10] : memref<1x64xf32, #tpu.memory_space<vmem>>, vector<1x64xf32>
    %13 = vector.broadcast %12 : vector<1x64xf32> to vector<16x64xf32>
    %14 = arith.addf %11, %13 : vector<16x64xf32>
    %cst_11 = arith.constant 0.000000e+00 : f32
    %15 = vector.broadcast %cst_11 : f32 to vector<16x64xf32>
    %16 = arith.maximumf %14, %15 : vector<16x64xf32>
    %17 = arith.truncf %16 : vector<16x64xf32> to vector<16x64xbf16>
    %c0_12 = arith.constant 0 : index
    %c0_13 = arith.constant 0 : index
    %18 = vector.load %arg6[%c0_12, %c0_13] : memref<64x8xbf16, #tpu.memory_space<vmem>>, vector<64x8xbf16>
    %cst_14 = arith.constant dense<0.000000e+00> : vector<16x8xf32>
    %19 = tpu.matmul %17, %18, %cst_14 {dimension_numbers = #tpu.dot_dimension_numbers<[1], [0], [0], [1], [0, 0, 1, 1], [], []>} : vector<16x64xbf16>, vector<64x8xbf16>, vector<16x8xf32> -> vector<16x8xf32>
    %c0_15 = arith.constant 0 : index
    %c0_16 = arith.constant 0 : index
    %20 = vector.load %arg7[%c0_15, %c0_16] : memref<1x8xf32, #tpu.memory_space<vmem>>, vector<1x8xf32>
    %21 = vector.broadcast %20 : vector<1x8xf32> to vector<16x8xf32>
    %22 = arith.addf %19, %21 : vector<16x8xf32>
    %c0_17 = arith.constant 0 : index
    %c0_18 = arith.constant 0 : index
    %23 = vector.load %arg8[%c0_17, %c0_18] : memref<16x8xf32, #tpu.memory_space<vmem>>, vector<16x8xf32>
    tpu.vector_store %arg8[%c0_17, %c0_18], %22 {strides = array<i32>} : memref<16x8xf32, #tpu.memory_space<vmem>>, vector<16x8xf32>,
    return
  }
  func.func @transform_0(%arg0: i32) -> (i32, i32) {
    %c0_i32 = arith.constant 0 : i32
    %c0_i32_0 = arith.constant 0 : i32
    return %arg0, %c0_i32 : i32, i32
  }
  func.func @transform_1(%arg0: i32) -> (i32, i32) {
    %c0_i32 = arith.constant 0 : i32
    %c0_i32_0 = arith.constant 0 : i32
    %c0_i32_1 = arith.constant 0 : i32
    return %c0_i32, %c0_i32_0 : i32, i32
  }
  func.func @transform_2(%arg0: i32) -> (i32, i32) {
    %c0_i32 = arith.constant 0 : i32
    %c0_i32_0 = arith.constant 0 : i32
    %c0_i32_1 = arith.constant 0 : i32
    return %c0_i32, %c0_i32_0 : i32, i32
  }
  func.func @transform_3(%arg0: i32) -> (i32, i32) {
    %c0_i32 = arith.constant 0 : i32
    %c0_i32_0 = arith.constant 0 : i32
    %c0_i32_1 = arith.constant 0 : i32
    return %c0_i32, %c0_i32_0 : i32, i32
  }
  func.func @transform_4(%arg0: i32) -> (i32, i32) {
    %c0_i32 = arith.constant 0 : i32
    %c0_i32_0 = arith.constant 0 : i32
    %c0_i32_1 = arith.constant 0 : i32
    return %c0_i32, %c0_i32_0 : i32, i32
  }
  func.func @transform_5(%arg0: i32) -> (i32, i32) {
    %c0_i32 = arith.constant 0 : i32
    %c0_i32_0 = arith.constant 0 : i32
    %c0_i32_1 = arith.constant 0 : i32
    return %c0_i32, %c0_i32_0 : i32, i32
  }
  func.func @transform_6(%arg0: i32) -> (i32, i32) {
    %c0_i32 = arith.constant 0 : i32
    %c0_i32_0 = arith.constant 0 : i32
    %c0_i32_1 = arith.constant 0 : i32
    return %c0_i32, %c0_i32_0 : i32, i32
  }
  func.func @transform_7(%arg0: i32) -> (i32, i32) {
    %c0_i32 = arith.constant 0 : i32
    %c0_i32_0 = arith.constant 0 : i32
    return %arg0, %c0_i32 : i32, i32
  }
}

</mosaic_0001>

<bundles_post_ra>
// kernel: _mlp_forward.1
= control target key start
LH: loop header
LB: loop body
LE: loop exit
PB: predicated region body
PF: predicated region fallthrough
CT: control target
= control target key end

     0   :  { %v399_v0 = vmov 0.0   ;;  %vm400_vm0 = vmmov 0   ;;  %vm53_vm1 = vcmask 261120   ;;  %vm255_vm2 = vcmask 523264   ;;  %s507_s1 = inlined_call_operand.vmem [shape: bf16[32,128], index: 1, kind: input, shape index: {}]   ;;  %s508_s0 = inlined_call_operand.vmem [shape: f32[16,32], index: 0, kind: input, shape index: {}]   ;;  %s509_s3 = inlined_call_operand.vmem [shape: bf16[128,64], index: 3, kind: input, shape index: {}]   ;;  %s510_s5 = inlined_call_operand.vmem [shape: bf16[64,8], index: 5, kind: input, shape index: {}]   ;;  %s511_s2 = inlined_call_operand.vmem [shape: f32[1,128], index: 2, kind: input, shape index: {}]   ;;  %s512_s4 = inlined_call_operand.vmem [shape: f32[1,64], index: 4, kind: input, shape index: {}]   ;;  %s513_s6 = inlined_call_operand.vmem [shape: f32[1,8], index: 6, kind: input, shape index: {}]   ;;  %s514_s7 = inlined_call_operand.vmem [shape: f32[16,8], index: 7, kind: output, shape index: {}]  }
   0x1   :  { %343 = vmatprep.subr.bf16.mxu0 %v399_v0  ;;  %v385_v1 = vld [vmem:[%s507_s1] sm:$0xff]   ;;  %347 = vmatprep.mubr.msk.bf16.mxu0 %vm400_vm0, %v399_v0  ;;  %v386_v2 = vld [vmem:[%s507_s1 + $0x8] sm:$0xff]   ;;  %v389_v8 = vld [vmem:[%s509_s3 + $0x10] sm:$0xff]   ;;  %vm300_vm3 = vcmask 64512  }
   0x2   :  { %351 = vmatprep.subr.bf16.mxu1 %v399_v0  ;;  %367 = vmatprep.mubr.msk.bf16.mxu1 %vm400_vm0, %v399_v0  ;;  %v27_v3 = vld [vmem:[%s508_s0] sm:$0xff]  ;;  %v28_v4 = vld [vmem:[%s508_s0 + $0x8] sm:$0xff]  ;;  %v390_v9 = vld [vmem:[%s509_s3 + $0x18] sm:$0xff]  }
   0x3   :  { %344 = vmatpush3.bf16.msra.mxu0 %v385_v1  ;;  %v387_v5 = vld [vmem:[%s509_s3] sm:$0xff]   ;;  %v29_v6 = vpack.c.bf16 %v28_v4, %v27_v3  ;;  %v388_v7 = vld [vmem:[%s509_s3 + $0x8] sm:$0xff]   ;;  %v393_v12 = vld [vmem:[%s509_s3 + $0x30] sm:$0xff]  }
   0x4   :  { %345 = vmatprep.subr.bf16.mxu0 %v399_v0  ;;  %352 = vmatpush3.bf16.msra.mxu1 %v387_v5  ;;  %v391_v10 = vld [vmem:[%s509_s3 + $0x20] sm:$0xff]   ;;  %v392_v11 = vld [vmem:[%s509_s3 + $0x28] sm:$0xff]   ;;  %v394_v13 = vld [vmem:[%s509_s3 + $0x38] sm:$0xff]  }
   0x5   :  { %353 = vmatprep.subr.bf16.mxu1 %v399_v0  ;;  %v395_v14 = vld [vmem:[%s510_s5] sm:$0xff]   ;;  %v396_v15 = vld [vmem:[%s510_s5 + $0x8] sm:$0xff]   ;;  %v397_v26 = vld [vmem:[%s510_s5 + $0x10] sm:$0xff]  }
   0x6   :  { %v307_v16 = vld [vmem:[%s511_s2] ss:$0 sm:$0xff]  ;;  %v398_v27 = vld [vmem:[%s510_s5 + $0x18] sm:$0xff]  }
   0x7   :  { %346 = vmatpush3.bf16.msra.mxu0 %v386_v2  ;;  %v311_v28 = vld [vmem:[%s512_s4] ss:$0 sm:$0xff] }
   0x8   :  { %371 = vmatprep.subr.bf16.mxu0 %v399_v0  ;;  %354 = vmatpush3.bf16.msra.mxu1 %v388_v7  ;;  %v320_v38 = vld [vmem:[%s513_s6] ss:$0 sm:$0xff] }
   0x9   :  { %355 = vmatprep.subr.bf16.mxu1 %v399_v0 }
   0xa   :  { %348 = vmatmul.mubr.msk.bf16.vlgmr.msra.gmra.mrb[0].mxu0 %vm53_vm1, %v29_v6 }
   0xb   :  { %379 = vmatprep.mubr.msk.bf16.mxu0 %vm400_vm0, %v399_v0  ;;  %372 = vmatpush3.bf16.msra.mxu0 %v395_v14 }
   0xc   :  { %356 = vmatpush3.bf16.msra.mxu1 %v389_v8  ;;  %373 = vmatprep.subr.bf16.mxu0 %v399_v0 }
   0xd   :  { %357 = vmatprep.subr.bf16.mxu1 %v399_v0 }
   0xf   :  { %374 = vmatpush3.bf16.msra.mxu0 %v396_v15 }
  0x10   :  { %358 = vmatpush3.bf16.msra.mxu1 %v390_v9  ;;  %375 = vmatprep.subr.bf16.mxu0 %v399_v0 }
  0x11   :  { %359 = vmatprep.subr.bf16.mxu1 %v399_v0 }
  0x13   :  { %376 = vmatpush3.bf16.msra.mxu0 %v397_v26 }
  0x14   :  { %360 = vmatpush3.bf16.msra.mxu1 %v391_v10  ;;  %377 = vmatprep.subr.bf16.mxu0 %v399_v0 }
  0x15   :  { %361 = vmatprep.subr.bf16.mxu1 %v399_v0 }
  0x17   :  { %378 = vmatpush3.bf16.msra.mxu0 %v398_v27 }
  0x18   :  { %362 = vmatpush3.bf16.msra.mxu1 %v392_v11 }
  0x19   :  { %363 = vmatprep.subr.bf16.mxu1 %v399_v0 }
  0x1c   :  { %364 = vmatpush3.bf16.msra.mxu1 %v393_v12 }
  0x1d   :  { %365 = vmatprep.subr.bf16.mxu1 %v399_v0 }
  0x20   :  { %366 = vmatpush3.bf16.msra.mxu1 %v394_v13 }
  0xdd   :  { %v91_v17 = vpop.f32.mrb[0].mxu0 }
  0xde   :  { %v92_v18 = vadd.f32 %v307_v16, %v91_v17  ;;  %v349_v19 = vpop.f32.mrb[1].mxu0 }
  0xdf   :  { %v94_v20 = vpop.f32.mrb[2].mxu0 }
  0xe0   :  { %v95_v21 = vadd.f32 %v307_v16, %v94_v20  ;;  %v350_v22 = vpop.f32.mrb[3].mxu0  ;;  %v98_v23 = vmax.f32 %v92_v18, 0.0 }
  0xe2   :  { %v99_v24 = vmax.f32 %v95_v21, 0.0 }
  0xe4   :  { %v100_v25 = vpack.c.bf16 %v99_v24, %v98_v23 }
  0xe6   :  { %368 = vmatmul.mubr.bf16.vlgmr.msra.gmra.mrb[0].mxu1 %v100_v25 }
 0x1b9   :  { %v206_v29 = vpop.f32.mrb[0].mxu1 }
 0x1ba   :  { %v207_v30 = vadd.f32 %v311_v28, %v206_v29  ;;  %v369_v31 = vpop.f32.mrb[1].mxu1 }
 0x1bb   :  { %v209_v32 = vpop.f32.mrb[2].mxu1 }
 0x1bc   :  { %v210_v33 = vadd.f32 %v311_v28, %v209_v32  ;;  %v370_v34 = vpop.f32.mrb[3].mxu1  ;;  %v213_v35 = vmax.f32 %v207_v30, 0.0 }
 0x1be   :  { %v214_v36 = vmax.f32 %v210_v33, 0.0 }
 0x1c0   :  { %v215_v37 = vpack.c.bf16 %v214_v36, %v213_v35 }
 0x1c2   :  { %380 = vmatmul.mubr.msk.bf16.vlgmr.msra.gmra.mrb[4].mxu0 %vm255_vm2, %v215_v37 }
 0x295   :  { %v293_v39 = vpop.f32.mrb[4].mxu0 }
 0x296   :  { %v294_v40 = vadd.f32 %v320_v38, %v293_v39  ;;  %v381_v41 = vpop.f32.mrb[5].mxu0 }
 0x297   :  { %v296_v42 = vpop.f32.mrb[6].mxu0 }
 0x298   :  { %301 = vst.msk [vmem:[%s514_s7] sm:$0xff] %vm300_vm3, %v294_v40  ;;  %v297_v43 = vadd.f32 %v320_v38, %v296_v42  ;;  %v382_v44 = vpop.f32.mrb[7].mxu0 }
 0x29a   :  { %302 = vst.msk [vmem:[%s514_s7 + $0x8] sm:$0xff] %vm300_vm3, %v297_v43 }

</bundles_post_ra>
